<compile_context>
chip_gen: v6e
topology: v6e:2x2x1
jax: 0.10.0
libtpu: 0.0.40
codegen_flags: <defaults>
</compile_context>

<pallas_src>
import functools

import jax
import jax.numpy as jnp
from jax.experimental import pallas as pl
from jax.experimental.pallas import tpu as pltpu

NUM_KNOWN = 10   # entropy() uses p[:, :10]
K_PAD = 128      # class dim padded to a full lane width


def _stamp_ua_kernel(x_ref, w_ref, sel_ref, b_ref, out_ref,
                     pool_acc, prob_acc, *, hw_t, inv_v):
    """Grid = (batch_block, view, hw_chunk).

    x_ref    : (1, BCB, hw_t) f32   current view / batch-block / HW chunk
    w_ref    : (BCB, 128)     f32   head weight * (1/HW), tiled per batch row
    sel_ref  : (TB, BCB)      f32   one-hot group-sum matrix (sums channels)
    b_ref    : (1, 128)       f32   head bias, padded classes = -1e30
    out_ref  : (TB, 128)      f32   mean-of-softmax (written on last step)
    pool_acc : (BCB, 128)     f32   lane-partial spatial sums (per view)
    prob_acc : (TB, 128)      f32   softmax-mean accumulator (per block)
    """
    v = pl.program_id(1)
    h = pl.program_id(2)
    nv = pl.num_programs(1)
    nh = pl.num_programs(2)

    @pl.when(h == 0)
    def _():
        pool_acc[...] = jnp.zeros_like(pool_acc)

    @pl.when((v == 0) & (h == 0))
    def _():
        prob_acc[...] = jnp.zeros_like(prob_acc)

    # VPU partial spatial reduction: fold the (BCB, hw_t) f32 chunk into a
    # (BCB, 128) partial with a tree of lane-contiguous 128-wide adds (plain
    # vld + vadd per slice; ~1 add/elem keeps the kernel HBM-bound on all
    # generations, unlike the 128x-redundant ones-matrix MXU pool).
    parts = [x_ref[0, :, j * 128:(j + 1) * 128] for j in range(hw_t // 128)]
    while len(parts) > 1:
        nxt = [parts[i] + parts[i + 1] for i in range(0, len(parts) - 1, 2)]
        if len(parts) % 2:
            nxt.append(parts[-1])
        parts = nxt
    pool_acc[...] += parts[0]

    # End of a view: finish the pool, apply the linear head, accumulate softmax.
    @pl.when(h == nh - 1)
    def _():
        # (BCB, 1) spatial sums (one tiny XLU lane-reduce per view).
        row_sum = jnp.sum(pool_acc[...], axis=-1, keepdims=True)
        # (BCB, 128): per-(batch,channel) contribution to every class lane;
        # 1/HW is folded into w_ref in the wrapper.
        prod = row_sum * w_ref[...]
        # Sum the C channel rows of each batch row with a tiny one-hot matmul
        # (avoids strided sublane loads entirely).
        logits = jnp.dot(sel_ref[...], prod,
                         preferred_element_type=jnp.float32) + b_ref[...]
        m = jnp.max(logits, axis=-1, keepdims=True)
        e = jnp.exp(logits - m)                     # padded lanes -> exactly 0
        s = jnp.sum(e, axis=-1, keepdims=True)
        prob_acc[...] += e / s                      # exact divide, once / view

    @pl.when((v == nv - 1) & (h == nh - 1))
    def _():
        out_ref[...] = (prob_acc[...] * inv_v).astype(out_ref.dtype)


def _round_up(x, m):
    return (x + m - 1) // m * m


def _pick_b_blocks(b, requested):
    """Largest block count <= requested keeping per-block batch 8-aligned."""
    for bb in range(min(requested, b), 1, -1):
        if b % bb == 0 and (b // bb) % 8 == 0:
            return bb
    return 1


def _pick_hw_tile(hw_pad, bcb, requested=None, target_bytes=4 * 1024 * 1024):
    """Multiple of 128 dividing hw_pad, targeting ~target_bytes per x block."""
    if requested is not None:
        t = max(128, min(_round_up(requested, 128), hw_pad))
    else:
        t = max(128, min((target_bytes // (bcb * 4)) // 128 * 128, hw_pad))
    while hw_pad % t != 0:
        t -= 128
    return t


@functools.partial(jax.jit, static_argnames=("hw_tile", "b_blocks"))
def stamp_ua_forward(x, w, b, *, hw_tile=None, b_blocks=2):
    """x: (V, B, C, H, W) float32; w: (C, K); b: (1, K).

    Returns (output (B, K), neg_entropy (B,)) like STAMP_UA.forward.
    """
    V, B, C, H, W = x.shape
    K = w.shape[1]
    HW = H * W
    HW_pad = _round_up(HW, 128)

    bb = _pick_b_blocks(B, b_blocks)     # >1 lights up both v7x TensorCores
    TB = B // bb
    BCB = TB * C

    hw_t = _pick_hw_tile(HW_pad, BCB, hw_tile)
    n_h = HW_pad // hw_t

    # f32 streamed straight into the kernel: no standalone cast/copy HBM pass.
    x2 = x.reshape(V, B * C, HW)
    if HW_pad != HW:
        # Zero-pad the spatial axis: the sum is unchanged and 1/HW below uses
        # the true HW; keeps every chunk lane-dense and within the VMEM budget.
        x2 = jnp.pad(x2, ((0, 0), (0, 0), (0, HW_pad - HW)))

    # Head, class dim padded to a full 128-lane width; 1/HW folded into W.
    w_scaled = jnp.zeros((C, K_PAD), jnp.float32).at[:, :K].set(
        w.astype(jnp.float32)) * (1.0 / HW)
    w_tiled = jnp.tile(w_scaled, (TB, 1))                       # (BCB, K_PAD)
    # -1e30 bias on padded classes (f32 only; exp underflows cleanly to 0).
    b_pad = jnp.full((1, K_PAD), -1e30, jnp.float32).at[0, :K].set(
        b.reshape(-1).astype(jnp.float32))
    # One-hot group-sum matrix: sel[b, b*C + c] = 1.
    sel = (jnp.arange(TB, dtype=jnp.int32)[:, None]
           == (jnp.arange(BCB, dtype=jnp.int32)[None, :] // C)
           ).astype(jnp.float32)

    kernel = functools.partial(_stamp_ua_kernel, hw_t=hw_t, inv_v=1.0 / V)

    # VMEM budget from the actual footprint (double-buffered x/out blocks +
    # resident head tensors + scratch), clamped well inside v7x's 64 MiB.
    bcb_v = _round_up(BCB, 8)
    tb_v = _round_up(TB, 8)
    needed = (2 * bcb_v * hw_t                       # x block, double-buffered
              + 2 * tb_v * K_PAD                     # out block
              + 2 * (bcb_v * K_PAD                   # w_tiled
                     + tb_v * _round_up(BCB, 128)    # sel
                     + 8 * K_PAD)                    # bias
              + bcb_v * K_PAD + tb_v * K_PAD         # scratch accumulators
              ) * 4
    vmem_limit = min(56 * 1024 * 1024,
                     max(16 * 1024 * 1024, needed + 2 * 1024 * 1024))

    grid_spec = pltpu.PrefetchScalarGridSpec(
        num_scalar_prefetch=0,
        grid=(bb, V, n_h),
        in_specs=[
            pl.BlockSpec((1, BCB, hw_t), lambda i, v, h: (v, i, h)),
            pl.BlockSpec((BCB, K_PAD), lambda i, v, h: (0, 0)),
            pl.BlockSpec((TB, BCB), lambda i, v, h: (0, 0)),
            pl.BlockSpec((1, K_PAD), lambda i, v, h: (0, 0)),
        ],
        out_specs=pl.BlockSpec((TB, K_PAD), lambda i, v, h: (i, 0)),
        scratch_shapes=[
            pltpu.VMEM((BCB, K_PAD), jnp.float32),   # lane-partial pool sums
            pltpu.VMEM((TB, K_PAD), jnp.float32),    # softmax-mean accumulator
        ],
    )

    out_pad = pl.pallas_call(
        kernel,
        out_shape=jax.ShapeDtypeStruct((B, K_PAD), jnp.float32),
        grid_spec=grid_spec,
        compiler_params=pltpu.CompilerParams(
            dimension_semantics=("parallel", "arbitrary", "arbitrary"),
            vmem_limit_bytes=int(vmem_limit),
        ),
    )(x2, w_tiled, sel, b_pad)

    out = out_pad[:, :K]

    # entropy() from the module, computed in the wrapper (O(B*11), negligible).
    p_known = out[:, :NUM_KNOWN]
    p_known = p_known / jnp.sum(p_known, axis=1, keepdims=True)
    ent = -jnp.sum(p_known * jnp.log(p_known + 1e-5), axis=1)
    return out, -ent


def _reference(x, w, b):
    """Pure-JAX f32 reference of the same forward."""
    V, B, C, H, W = x.shape
    pooled = jnp.mean(x.reshape(V, B, C, H * W).astype(jnp.float32), axis=-1)
    logits = jnp.einsum("vbc,ck->vbk", pooled, w) + b.reshape(1, 1, -1)
    probs = jax.nn.softmax(logits, axis=-1)
    out = jnp.mean(probs, axis=0)                                   # (B, K)
    p_known = out[:, :NUM_KNOWN]
    p_known = p_known / jnp.sum(p_known, axis=1, keepdims=True)
    ent = -jnp.sum(p_known * jnp.log(p_known + 1e-5), axis=1)
    return out, -ent


if __name__ == "__main__":
    key = jax.random.PRNGKey(0)
    kx, kw, kb = jax.random.split(key, 3)

    V, B, C, H, W = 3, 2, 4, 16, 16          # 3 augmented views, NCHW batch
    K = NUM_KNOWN + 1                        # 10 known classes + 1 unknown

    x = jax.random.normal(kx, (V, B, C, H, W), dtype=jnp.float32)
    w = jax.random.normal(kw, (C, K), dtype=jnp.float32) * 0.1
    b = jax.random.normal(kb, (1, K), dtype=jnp.float32) * 0.01

    ref_out, ref_neg_ent = _reference(x, w, b)

    # hw_tile=128 forces 2 HW chunks so the chunked-accumulation path is
    # exercised even at toy spatial dims (default targets ~4 MiB blocks).
    out, neg_ent = stamp_ua_forward(x, w, b, hw_tile=128)
    jax.block_until_ready((out, neg_ent))
    assert out.shape == (B, K) and neg_ent.shape == (B,)
    assert jnp.allclose(out, ref_out, atol=1e-4, rtol=1e-4), "output mismatch"
    assert jnp.allclose(neg_ent, ref_neg_ent, atol=1e-4, rtol=1e-4), \
        "entropy mismatch"

    # Default (single-chunk, auto-sized block) path.
    out2, neg_ent2 = stamp_ua_forward(x, w, b)
    jax.block_until_ready((out2, neg_ent2))
    assert jnp.allclose(out2, ref_out, atol=1e-4, rtol=1e-4), "output mismatch"
    assert jnp.allclose(neg_ent2, ref_neg_ent, atol=1e-4, rtol=1e-4), \
        "entropy mismatch"

    print("KERNEL_OK")
</pallas_src>

<mosaic_0001>
module attributes {stable_mosaic.version = 11 : i64} {
  func.func @_stamp_ua_kernel(%arg0: i32, %arg1: i32, %arg2: i32, %arg3: memref<1x8x128xf32, #tpu.memory_space<vmem>>, %arg4: memref<8x128xf32, #tpu.memory_space<vmem>>, %arg5: memref<2x8xf32, #tpu.memory_space<vmem>>, %arg6: memref<1x128xf32, #tpu.memory_space<vmem>>, %arg7: memref<2x128xf32, #tpu.memory_space<vmem>>, %arg8: memref<8x128xf32, #tpu.memory_space<vmem>>, %arg9: memref<2x128xf32, #tpu.memory_space<vmem>>) attributes {dimension_semantics = [#tpu.dimension_semantics<parallel>, #tpu.dimension_semantics<arbitrary>, #tpu.dimension_semantics<arbitrary>], iteration_bounds = array<i64: 1, 3, 2>, scalar_prefetch = 0 : i64, scratch_operands = 2 : i64, tpu.core_type = #tpu.core_type<tc>, window_params = [{transform_indices = @transform_0, window_bounds = array<i64: 1, 8, 128>}, {pipeline_mode = #tpu.pipeline_mode<synchronous>, transform_indices = @transform_1, window_bounds = array<i64: 8, 128>}, {pipeline_mode = #tpu.pipeline_mode<synchronous>, transform_indices = @transform_2, window_bounds = array<i64: 2, 8>}, {pipeline_mode = #tpu.pipeline_mode<synchronous>, transform_indices = @transform_3, window_bounds = array<i64: 1, 128>}, {transform_indices = @transform_4, window_bounds = array<i64: 2, 128>}]} {
    %c0_i32 = arith.constant 0 : i32
    %0 = arith.cmpi eq, %arg2, %c0_i32 : i32
    %1 = arith.extui %0 : i1 to i32
    %c0_i32_0 = arith.constant 0 : i32
    %2 = arith.cmpi ne, %1, %c0_i32_0 : i32
    scf.if %2 {
      %cst = arith.constant 0.000000e+00 : f32
      %21 = vector.broadcast %cst : f32 to vector<8x128xf32>
      %c0_13 = arith.constant 0 : index
      %c0_14 = arith.constant 0 : index
      %22 = vector.load %arg8[%c0_13, %c0_14] : memref<8x128xf32, #tpu.memory_space<vmem>>, vector<8x128xf32>
      tpu.vector_store %arg8[%c0_13, %c0_14], %21 {strides = array<i32>} : memref<8x128xf32, #tpu.memory_space<vmem>>, vector<8x128xf32>,
    } else {
    }
    %c0_i32_1 = arith.constant 0 : i32
    %3 = arith.cmpi eq, %arg1, %c0_i32_1 : i32
    %c0_i32_2 = arith.constant 0 : i32
    %4 = arith.cmpi eq, %arg2, %c0_i32_2 : i32
    %5 = arith.andi %3, %4 : i1
    %6 = arith.extui %5 : i1 to i32
    %c0_i32_3 = arith.constant 0 : i32
    %7 = arith.cmpi ne, %6, %c0_i32_3 : i32
    scf.if %7 {
      %cst = arith.constant 0.000000e+00 : f32
      %21 = vector.broadcast %cst : f32 to vector<2x128xf32>
      %c0_13 = arith.constant 0 : index
      %c0_14 = arith.constant 0 : index
      %22 = vector.load %arg9[%c0_13, %c0_14] : memref<2x128xf32, #tpu.memory_space<vmem>>, vector<2x128xf32>
      tpu.vector_store %arg9[%c0_13, %c0_14], %21 {strides = array<i32>} : memref<2x128xf32, #tpu.memory_space<vmem>>, vector<2x128xf32>,
    } else {
    }
    %c0 = arith.constant 0 : index
    %c0_4 = arith.constant 0 : index
    %c0_5 = arith.constant 0 : index
    %8 = vector.load %arg3[%c0, %c0_4, %c0_5] : memref<1x8x128xf32, #tpu.memory_space<vmem>>, vector<1x8x128xf32>
    %9 = vector.shape_cast %8 : vector<1x8x128xf32> to vector<8x128xf32>
    %c0_6 = arith.constant 0 : index
    %c0_7 = arith.constant 0 : index
    %10 = vector.load %arg8[%c0_6, %c0_7] : memref<8x128xf32, #tpu.memory_space<vmem>>, vector<8x128xf32>
    %11 = arith.addf %10, %9 : vector<8x128xf32>
    %c0_8 = arith.constant 0 : index
    %c0_9 = arith.constant 0 : index
    %12 = vector.load %arg8[%c0_8, %c0_9] : memref<8x128xf32, #tpu.memory_space<vmem>>, vector<8x128xf32>
    tpu.vector_store %arg8[%c0_8, %c0_9], %11 {strides = array<i32>} : memref<8x128xf32, #tpu.memory_space<vmem>>, vector<8x128xf32>,
    %c1_i32 = arith.constant 1 : i32
    %13 = arith.cmpi eq, %arg2, %c1_i32 : i32
    %14 = arith.extui %13 : i1 to i32
    %c0_i32_10 = arith.constant 0 : i32
    %15 = arith.cmpi ne, %14, %c0_i32_10 : i32
    scf.if %15 {
      %c0_13 = arith.constant 0 : index
      %c0_14 = arith.constant 0 : index
      %21 = vector.load %arg8[%c0_13, %c0_14] : memref<8x128xf32, #tpu.memory_space<vmem>>, vector<8x128xf32>
      %cst = arith.constant dense<0.000000e+00> : vector<8xf32>
      %22 = vector.multi_reduction <add>, %21, %cst [1] : vector<8x128xf32> to vector<8xf32>
      %23 = vector.shape_cast %22 : vector<8xf32> to vector<8x1xf32>
      %c0_15 = arith.constant 0 : index
      %c0_16 = arith.constant 0 : index
      %24 = vector.load %arg4[%c0_15, %c0_16] : memref<8x128xf32, #tpu.memory_space<vmem>>, vector<8x128xf32>
      %25 = vector.broadcast %23 : vector<8x1xf32> to vector<8x128xf32>
      %26 = arith.mulf %25, %24 : vector<8x128xf32>
      %c0_17 = arith.constant 0 : index
      %c0_18 = arith.constant 0 : index
      %27 = vector.load %arg5[%c0_17, %c0_18] : memref<2x8xf32, #tpu.memory_space<vmem>>, vector<2x8xf32>
      %cst_19 = arith.constant dense<0.000000e+00> : vector<2x128xf32>
      %28 = tpu.matmul %27, %26, %cst_19 {dimension_numbers = #tpu.dot_dimension_numbers<[1], [0], [0], [1], [0, 0, 1, 1], [], []>} : vector<2x8xf32>, vector<8x128xf32>, vector<2x128xf32> -> vector<2x128xf32>
      %c0_20 = arith.constant 0 : index
      %c0_21 = arith.constant 0 : index
      %29 = vector.load %arg6[%c0_20, %c0_21] : memref<1x128xf32, #tpu.memory_space<vmem>>, vector<1x128xf32>
      %30 = vector.broadcast %29 : vector<1x128xf32> to vector<2x128xf32>
      %31 = arith.addf %28, %30 : vector<2x128xf32>
      %cst_22 = arith.constant dense<0xFF800000> : vector<2xf32>
      %32 = vector.multi_reduction <maximumf>, %31, %cst_22 [1] : vector<2x128xf32> to vector<2xf32>
      %33 = vector.shape_cast %32 : vector<2xf32> to vector<2x1xf32>
      %34 = vector.broadcast %33 : vector<2x1xf32> to vector<2x128xf32>
      %35 = arith.subf %31, %34 : vector<2x128xf32>
      %36 = math.exp %35 : vector<2x128xf32>
      %cst_23 = arith.constant dense<0.000000e+00> : vector<2xf32>
      %37 = vector.multi_reduction <add>, %36, %cst_23 [1] : vector<2x128xf32> to vector<2xf32>
      %38 = vector.shape_cast %37 : vector<2xf32> to vector<2x1xf32>
      %c0_24 = arith.constant 0 : index
      %c0_25 = arith.constant 0 : index
      %39 = vector.load %arg9[%c0_24, %c0_25] : memref<2x128xf32, #tpu.memory_space<vmem>>, vector<2x128xf32>
      %40 = vector.broadcast %38 : vector<2x1xf32> to vector<2x128xf32>
      %41 = arith.divf %36, %40 : vector<2x128xf32>
      %42 = arith.addf %39, %41 : vector<2x128xf32>
      %c0_26 = arith.constant 0 : index
      %c0_27 = arith.constant 0 : index
      %43 = vector.load %arg9[%c0_26, %c0_27] : memref<2x128xf32, #tpu.memory_space<vmem>>, vector<2x128xf32>
      tpu.vector_store %arg9[%c0_26, %c0_27], %42 {strides = array<i32>} : memref<2x128xf32, #tpu.memory_space<vmem>>, vector<2x128xf32>,
    } else {
    }
    %c2_i32 = arith.constant 2 : i32
    %16 = arith.cmpi eq, %arg1, %c2_i32 : i32
    %c1_i32_11 = arith.constant 1 : i32
    %17 = arith.cmpi eq, %arg2, %c1_i32_11 : i32
    %18 = arith.andi %16, %17 : i1
    %19 = arith.extui %18 : i1 to i32
    %c0_i32_12 = arith.constant 0 : i32
    %20 = arith.cmpi ne, %19, %c0_i32_12 : i32
    scf.if %20 {
      %c0_13 = arith.constant 0 : index
      %c0_14 = arith.constant 0 : index
      %21 = vector.load %arg9[%c0_13, %c0_14] : memref<2x128xf32, #tpu.memory_space<vmem>>, vector<2x128xf32>
      %cst = arith.constant 0.333333343 : f32
      %22 = vector.broadcast %cst : f32 to vector<2x128xf32>
      %23 = arith.mulf %21, %22 : vector<2x128xf32>
      %c0_15 = arith.constant 0 : index
      %c0_16 = arith.constant 0 : index
      %24 = vector.load %arg7[%c0_15, %c0_16] : memref<2x128xf32, #tpu.memory_space<vmem>>, vector<2x128xf32>
      tpu.vector_store %arg7[%c0_15, %c0_16], %23 {strides = array<i32>} : memref<2x128xf32, #tpu.memory_space<vmem>>, vector<2x128xf32>,
    } else {
    }
    return
  }
  func.func @transform_0(%arg0: i32, %arg1: i32, %arg2: i32) -> (i32, i32, i32) {
    %c0_i32 = arith.constant 0 : i32
    return %arg1, %arg0, %arg2 : i32, i32, i32
  }
  func.func @transform_1(%arg0: i32, %arg1: i32, %arg2: i32) -> (i32, i32) {
    %c0_i32 = arith.constant 0 : i32
    %c0_i32_0 = arith.constant 0 : i32
    %c0_i32_1 = arith.constant 0 : i32
    return %c0_i32, %c0_i32_0 : i32, i32
  }
  func.func @transform_2(%arg0: i32, %arg1: i32, %arg2: i32) -> (i32, i32) {
    %c0_i32 = arith.constant 0 : i32
    %c0_i32_0 = arith.constant 0 : i32
    %c0_i32_1 = arith.constant 0 : i32
    return %c0_i32, %c0_i32_0 : i32, i32
  }
  func.func @transform_3(%arg0: i32, %arg1: i32, %arg2: i32) -> (i32, i32) {
    %c0_i32 = arith.constant 0 : i32
    %c0_i32_0 = arith.constant 0 : i32
    %c0_i32_1 = arith.constant 0 : i32
    return %c0_i32, %c0_i32_0 : i32, i32
  }
  func.func @transform_4(%arg0: i32, %arg1: i32, %arg2: i32) -> (i32, i32) {
    %c0_i32 = arith.constant 0 : i32
    %c0_i32_0 = arith.constant 0 : i32
    return %arg0, %c0_i32 : i32, i32
  }
}

</mosaic_0001>

<bundles_post_ra>
// kernel: stamp_ua_forward.1
= control target key start
LH: loop header
LB: loop body
LE: loop exit
PB: predicated region body
PF: predicated region fallthrough
CT: control target
= control target key end

     0   :  { %s583_s15 = smov 0   ;;  %s585_s16 = smov 0   ;;  %s661_s0 = inlined_call_operand.vmem [shape: f32[3,8,256], index: 0, kind: input, shape index: {}]   ;;  %s662_s1 = inlined_call_operand.vmem [shape: f32[8,128], index: 1, kind: input, shape index: {}]   ;;  %s663_s2 = inlined_call_operand.vmem [shape: f32[2,8], index: 2, kind: input, shape index: {}]   ;;  %s664_s3 = inlined_call_operand.vmem [shape: f32[1,128], index: 3, kind: input, shape index: {}]   ;;  %s665_s4 = inlined_call_operand.vmem [shape: f32[2,128], index: 4, kind: output, shape index: {}]  }
   0x1   :  { %s587_s17 = smov 0   ;;  %s589_s18 = smov 0  }
   0x2   :  { %s591_s19 = smov 0  }
   0x3 LB: > { %s26_s20 = sadd.s32 1, %s544_s17  ;;  %s29_s21 = sadd.s32 1, %s548_s18  ;;  %s552_s19 = sphi %s591_s19, %s14_s19   ;;  %s548_s18 = sphi %s589_s18, %s669_s18   ;;  %s544_s17 = sphi %s587_s17, %s668_s17   ;;  %s540_s16 = sphi %s585_s16, %s667_s16   ;;  %s536_s15 = sphi %s583_s15, %s666_s15  }
   0x4   : > { %p27_p0 = scmp.ge.s32.totalorder %s26_s20, 2  ;;  %p449_p1 = scmp.ge.s32.totalorder %s552_s19, 1 }
   0x5   : > { %p192_p2 = scmp.lt.s32.totalorder %s552_s19, 7 }
   0x6   : > { %s671_s20 = smov (%p27_p0, %s26_s20), 0  ;;  %s673_s21 = smov (!%p27_p0, %s29_s21), %s548_s18 }
   0x7   : > { %p193_p3 = pnand %p449_p1, %p192_p2  ;;  %p31_p4 = scmp.ge.s32.totalorder %s673_s21, 3 }
   0x8   : > { %p224_p5 = scmp.lt.s32.totalorder (!%p193_p3), %s540_s16, 2  ;;  %p228_p6 = scmp.lt.s32.totalorder (!%p193_p3), %s536_s15, 1 }
   0x9   : > { %s675_s21 = smov (%p31_p4, %s673_s21), 0  ;;  %196 = sbr.rel (%p193_p3) target bundleno = 710 (0x2c6), region = 36 }
   0xa   : > { %p240_p7 = scmp.eq.s32.totalorder (!%p193_p3), %s536_s15, 0  ;;  %p452_p8 = scmp.ne.s32.totalorder (!%p193_p3), %s536_s15, 0 }
   0xe   : > { %s225_s22 = scalar_select %p224_p5, %s540_s16, 2 }
   0xf   : > { %s229_s23 = scalar_select %p228_p6, %s536_s15, 1 }
  0x10   : > { %s450_s24 = sshll.u32 %s225_s22, 1  ;;  %243 = sbr.rel (%p452_p8) target bundleno = 23 (0x17), region = 40 }
  0x11   : > { %s233_s25 = sadd.s32 %s450_s24, %s229_s23 }
  0x12   : > { %s451_s26 = sshll.u32 %s233_s25, 3 }
  0x13   : > { %s235_s29 = scalar_lea.vmem %s661_s0, %s451_s26 }
  0x15   : > { %v554_v0 = vmov 0.0  }
  0x16   : > { %244 = vst [vmem:[#allocation2] sm:$0xff] %v554_v0 }
  0x17 PF: > { %p245_p9 = scmp.eq.s32.totalorder %s540_s16, 0 }
  0x19   : > { %p246_p10 = pnand %p245_p9, %p240_p7 }
  0x1b   : > { %249 = sbr.rel (%p246_p10) target bundleno = 34 (0x22), region = 44 }
  0x20   : > { %v555_v1 = vmov 0.0  }
  0x21   : > { %250 = vst [vmem:[#allocation3] sm:$0x3] %v555_v1 }
  0x22 PF: > { %v251_v2 = vld [vmem:[%s235_s29] sm:$0xff]  ;;  %p255_p11 = scmp.eq.s32.totalorder %s536_s15, 1  ;;  %p453_p12 = scmp.ne.s32.totalorder %s536_s15, 1 }
  0x23   : > { %v252_v3 = vld [vmem:[#allocation2] sm:$0xff] }
  0x24   : > { %v253_v4 = vadd.f32 %v252_v3, %v251_v2  ;;  %258 = sbr.rel (%p453_p12) target bundleno = 697 (0x2b9), region = 48 }
  0x26   : > { %254 = vst [vmem:[#allocation2] sm:$0xff] %v253_v4 }
  0x29   : > { %v556_v6 = vmov 0.0   ;;  %vm557_vm0 = vmmov 0   ;;  %v262_v7 = vld [vmem:[%s662_s1] sm:$0xff]  ;;  %vm272_vm1 = vcmask 64512   ;;  %vm346_vm2 = vcmask 1041408  }
  0x2a   : > { %461 = vmatprep.subr.mxu0 %v556_v6  ;;  %463 = vmatprep.mubr.msk.f32.mxu0 %vm557_vm0, %v556_v6  ;;  %v264_v10 = vld [vmem:[%s663_s2] sm:$0x3]  ;;  %v356_v23 = vld [vmem:[#allocation3] sm:$0x3] }
  0x2b   : > { %v454_v11 = vld [vmem:[%s664_s3] ss:$0 sm:$0xff] }
  0x2d   : > { %v259_v5 = vld [vmem:[#allocation2] sm:$0xff] }
  0x2e   : > { %260 = vadd.xlane.f32.xlu0 %v259_v5 }
  0xb7   : > { %v261_v8 = vpop.xlane.xlu0 %260 }
  0xb8   : > { %v263_v9 = vmul.f32 %v262_v7, %v261_v8 }
  0xba   : > { %462 = vmatpush3.msra.mxu0 %v263_v9 }
  0xbb   : > { %464 = vmatmul.mubr.msk.f32.vlgmr.msra.gmra.mxu0 %vm272_vm1, %v264_v10 }
 0x17b   : > { %v342_v12 = vpop.f32.mrf.mxu0 }
 0x17c   : > { %v343_v13 = vadd.f32 %v454_v11, %v342_v12 }
 0x17d   : > { %v465_v14 = vpop.f32.mrf.mxu0 }
 0x17e   : > { %v347_v15 = vsel %vm346_vm2, %v343_v13, -inf }
 0x17f   : > { %348 = vmax.xlane.f32.xlu0 %v347_v15 }
 0x208   : > { %v349_v16 = vpop.xlane.xlu0 %348 }
 0x209   : > { %v350_v17 = vsub.f32 %v343_v13, %v349_v16 }
 0x20b   : > { %v351_v18 = vmul.f32 1.442695, %v350_v17 }
 0x20d   : > { %510 = vpow2.f32 %v351_v18 }
 0x21a   : > { %v511_v19 = vpop.eup %510 }
 0x21b   : > { %v353_v20 = vsel %vm346_vm2, %v511_v19, 0.0 }
 0x21c   : > { %354 = vadd.xlane.f32.xlu1 %v353_v20 }
 0x2a5   : > { %v355_v21 = vpop.xlane.xlu1 %354 }
 0x2a6   : > { %512 = vrcp.f32 %v355_v21 }
 0x2b3   : > { %v513_v22 = vpop.eup %512 }
 0x2b4   : > { %v358_v24 = vmul.f32 %v513_v22, %v511_v19 }
 0x2b6   : > { %v359_v25 = vadd.f32 %v358_v24, %v356_v23 }
 0x2b8   : > { %360 = vst [vmem:[#allocation3] sm:$0x3] %v359_v25 }
 0x2b9 PF: > { %p361_p13 = scmp.eq.s32.totalorder %s540_s16, 2 }
 0x2bb   : > { %p362_p0 = pnand %p361_p13, %p255_p11 }
 0x2bd   : > { %365 = sbr.rel (%p362_p0) target bundleno = 710 (0x2c6), region = 52 }
 0x2c2   : > { %v366_v26 = vld [vmem:[#allocation3] sm:$0x3] }
 0x2c3   : > { %v367_v27 = vmul.f32 0.33333334, %v366_v26 }
 0x2c5   : > { %368 = vst [vmem:[%s665_s4] sm:$0x3] %v367_v27 }
 0x2c6 PF: > { %s14_s19 = sadd.s32 1, %s552_s19   ;;  %s666_s15 = smov %s544_s17 }
 0x2c7   : > { %p11_p1 = scmp.ge.s32.totalorder %s14_s19, 8   ;;  %s667_s16 = smov %s548_s18 }
 0x2c8   : > { %s668_s17 = smov %s671_s20  ;;  %s669_s18 = smov %s675_s21 }
 0x2c9   :  { %13 = sbr.rel (!%p11_p1) target bundleno = 3 (0x3), region = 82 }

</bundles_post_ra>
